<compile_context>
chip_gen: v5e
topology: v5e:2x2
jax: 0.10.0
libtpu: 0.0.40
codegen_flags: <defaults>
</compile_context>

<pallas_src>
import functools
import math

import jax
import jax.numpy as jnp
from jax import lax
from jax.experimental import pallas as pl
from jax.experimental.pallas import tpu as pltpu

NEG_INF = -jnp.inf


def _mha_kernel(x_ref, wqkv_ref, wo_ref, o_ref, *, num_heads, head_dim, d_out, tq, scale):
    # x_ref   : (1, T, d_in)       full sequence of the current batch element
    # wqkv_ref: (d_in, 3*d_out)    fused [Wq | Wk | Wv] (pre-transposed)
    # wo_ref  : (d_out, d_out)     combine_head projection (pre-transposed)
    # o_ref   : (1, tq, d_out)     output tile (lane-dense last dim)
    qt = pl.program_id(1)
    T = x_ref.shape[1]

    x = x_ref[0].astype(jnp.float32)                       # (T, d_in)
    wqkv = wqkv_ref[...].astype(jnp.float32)               # (d_in, 3*d_out)
    wo = wo_ref[...].astype(jnp.float32)                   # (d_out, d_out)

    # Single fused projection for Q, K, V (one MXU pass, N = 3*d_out).
    qkv = jnp.dot(x, wqkv, preferred_element_type=jnp.float32)  # (T, 3*d_out)
    q_full = qkv[:, :d_out]
    k = qkv[:, d_out:2 * d_out]
    v = qkv[:, 2 * d_out:]

    if tq == T:  # static branch: single query tile -> no dynamic slice needed
        q = q_full
    else:
        q = lax.dynamic_slice_in_dim(q_full, qt * tq, tq, axis=0)  # (tq, d_out)

    # Split heads: contiguous head_dim slices of d_out (same as torch .view/.transpose).
    qh = q.reshape(tq, num_heads, head_dim).transpose(1, 0, 2)     # (H, tq, hd)
    kh = k.reshape(T, num_heads, head_dim).transpose(1, 0, 2)      # (H, T,  hd)
    vh = v.reshape(T, num_heads, head_dim).transpose(1, 0, 2)      # (H, T,  hd)

    # Attention scores for all heads at once.
    s = jnp.einsum("hqd,hkd->hqk", qh, kh,
                   preferred_element_type=jnp.float32) * scale     # (H, tq, T)

    # Causal mask (strict upper triangle), offset by the query-tile origin.
    row = qt * tq + lax.broadcasted_iota(jnp.int32, (tq, T), 0)
    col = lax.broadcasted_iota(jnp.int32, (tq, T), 1)
    s = jnp.where((col > row)[None, :, :], NEG_INF, s)

    # Numerically stable softmax over keys.
    m = jnp.max(s, axis=-1, keepdims=True)
    e = jnp.exp(s - m)
    a = e / jnp.sum(e, axis=-1, keepdims=True)

    # TODO(synk): dropout with p > 0 (training mode) not implemented; eval-mode identity here.

    ctx = jnp.einsum("hqk,hkd->hqd", a, vh,
                     preferred_element_type=jnp.float32)           # (H, tq, hd)
    ctx = ctx.transpose(1, 0, 2).reshape(tq, d_out)                # concat heads -> (tq, d_out)

    out = jnp.dot(ctx, wo, preferred_element_type=jnp.float32)     # combine_head
    o_ref[0] = out.astype(o_ref.dtype)


def multi_head_attention(x, wq, wk, wv, wo, *, num_heads, tq=None):
    """x: (B, T, d_in); wq/wk/wv: (d_in, d_out); wo: (d_out, d_out) -> (B, T, d_out)."""
    B, T, d_in = x.shape
    d_out = wq.shape[1]
    assert d_out % num_heads == 0
    head_dim = d_out // num_heads

    if tq is None:
        tq = min(T, 128)           # bounds the (tq, T) score working set for large T
    assert T % tq == 0
    scale = 1.0 / math.sqrt(float(d_out))   # module divides by sqrt(d_out), not sqrt(head_dim)

    # Fused [Wq | Wk | Wv]: one weight DMA and one projection matmul per grid step.
    w_qkv = jnp.concatenate([wq, wk, wv], axis=1)                  # (d_in, 3*d_out)

    kernel = functools.partial(_mha_kernel, num_heads=num_heads, head_dim=head_dim,
                               d_out=d_out, tq=tq, scale=scale)
    return pl.pallas_call(
        kernel,
        out_shape=jax.ShapeDtypeStruct((B, T, d_out), x.dtype),
        grid_spec=pltpu.PrefetchScalarGridSpec(
            num_scalar_prefetch=0,
            grid=(B, T // tq),
            in_specs=[
                pl.BlockSpec((1, T, d_in), lambda b, i: (b, 0, 0)),
                pl.BlockSpec((d_in, 3 * d_out), lambda b, i: (0, 0)),
                pl.BlockSpec((d_out, d_out), lambda b, i: (0, 0)),
            ],
            out_specs=pl.BlockSpec((1, tq, d_out), lambda b, i: (b, i, 0)),
        ),
        compiler_params=pltpu.CompilerParams(
            dimension_semantics=("parallel", "parallel"),
            vmem_limit_bytes=32 * 1024 * 1024,
        ),
    )(x, w_qkv, wo)


def _reference(x, wq, wk, wv, wo, num_heads):
    """Pure-JAX mirror of the PyTorch forward (eval mode), for verification."""
    B, T, d_in = x.shape
    d_out = wq.shape[1]
    hd = d_out // num_heads
    q = (x @ wq).reshape(B, T, num_heads, hd).transpose(0, 2, 1, 3)
    k = (x @ wk).reshape(B, T, num_heads, hd).transpose(0, 2, 1, 3)
    v = (x @ wv).reshape(B, T, num_heads, hd).transpose(0, 2, 1, 3)
    s = q @ jnp.swapaxes(k, -2, -1)
    mask = jnp.triu(jnp.ones((T, T), dtype=bool), k=1)
    s = jnp.where(mask, NEG_INF, s)
    a = jax.nn.softmax(s / math.sqrt(d_out), axis=-1)
    ctx = (a @ v).transpose(0, 2, 1, 3).reshape(B, T, d_out)
    return ctx @ wo


if __name__ == "__main__":
    # Small shapes consistent with the module.
    num_heads, d_in, d_out = 4, 32, 64
    B, T = 2, 8            # context_length == T

    key = jax.random.PRNGKey(0)
    kx, kq, kk, kv, ko = jax.random.split(key, 5)

    x = jax.random.normal(kx, (B, T, d_in), dtype=jnp.float32)
    # nn.Linear(in, out, bias=False) weight is (out, in); store transposed so the
    # kernel computes x @ W directly. Deterministic uniform init (PyTorch-like bound).
    bq = 1.0 / math.sqrt(d_in)
    bo = 1.0 / math.sqrt(d_out)
    wq = jax.random.uniform(kq, (d_in, d_out), jnp.float32, -bq, bq)
    wk = jax.random.uniform(kk, (d_in, d_out), jnp.float32, -bq, bq)
    wv = jax.random.uniform(kv, (d_in, d_out), jnp.float32, -bq, bq)
    wo = jax.random.uniform(ko, (d_out, d_out), jnp.float32, -bo, bo)

    out = multi_head_attention(x, wq, wk, wv, wo, num_heads=num_heads)
    out = jax.block_until_ready(out)

    ref = _reference(x, wq, wk, wv, wo, num_heads)
    assert out.shape == (B, T, d_out), out.shape
    assert jnp.allclose(out, ref, atol=1e-5, rtol=1e-5), "mismatch vs reference"

    print("KERNEL_OK")
</pallas_src>

<mosaic_0001>
module attributes {stable_mosaic.version = 11 : i64} {
  func.func @_mha_kernel(%arg0: i32, %arg1: i32, %arg2: memref<1x8x32xf32, #tpu.memory_space<vmem>>, %arg3: memref<32x192xf32, #tpu.memory_space<vmem>>, %arg4: memref<64x64xf32, #tpu.memory_space<vmem>>, %arg5: memref<1x8x64xf32, #tpu.memory_space<vmem>>) attributes {dimension_semantics = [#tpu.dimension_semantics<parallel>, #tpu.dimension_semantics<parallel>], iteration_bounds = array<i64: 2, 1>, scalar_prefetch = 0 : i64, scratch_operands = 0 : i64, tpu.core_type = #tpu.core_type<tc>, window_params = [{transform_indices = @transform_0, window_bounds = array<i64: 1, 8, 32>}, {pipeline_mode = #tpu.pipeline_mode<synchronous>, transform_indices = @transform_1, window_bounds = array<i64: 32, 192>}, {pipeline_mode = #tpu.pipeline_mode<synchronous>, transform_indices = @transform_2, window_bounds = array<i64: 64, 64>}, {transform_indices = @transform_3, window_bounds = array<i64: 1, 8, 64>}]} {
    %c0 = arith.constant 0 : index
    %c0_0 = arith.constant 0 : index
    %c0_1 = arith.constant 0 : index
    %0 = vector.load %arg2[%c0, %c0_0, %c0_1] : memref<1x8x32xf32, #tpu.memory_space<vmem>>, vector<1x8x32xf32>
    %1 = vector.shape_cast %0 : vector<1x8x32xf32> to vector<8x32xf32>
    %c0_2 = arith.constant 0 : index
    %c0_3 = arith.constant 0 : index
    %2 = vector.load %arg3[%c0_2, %c0_3] : memref<32x192xf32, #tpu.memory_space<vmem>>, vector<32x192xf32>
    %c0_4 = arith.constant 0 : index
    %c0_5 = arith.constant 0 : index
    %3 = vector.load %arg4[%c0_4, %c0_5] : memref<64x64xf32, #tpu.memory_space<vmem>>, vector<64x64xf32>
    %cst = arith.constant dense<0.000000e+00> : vector<8x192xf32>
    %4 = tpu.matmul %1, %2, %cst {dimension_numbers = #tpu.dot_dimension_numbers<[1], [0], [0], [1], [0, 0, 1, 1], [], []>} : vector<8x32xf32>, vector<32x192xf32>, vector<8x192xf32> -> vector<8x192xf32>
    %5 = vector.extract_strided_slice %4 {offsets = [0, 0], sizes = [8, 64], strides = [1, 1]} : vector<8x192xf32> to vector<8x64xf32>
    %6 = vector.extract_strided_slice %4 {offsets = [0, 64], sizes = [8, 64], strides = [1, 1]} : vector<8x192xf32> to vector<8x64xf32>
    %7 = vector.extract_strided_slice %4 {offsets = [0, 128], sizes = [8, 64], strides = [1, 1]} : vector<8x192xf32> to vector<8x64xf32>
    %8 = vector.shape_cast %5 : vector<8x64xf32> to vector<8x4x16xf32>
    %9 = tpu.transpose %8, [1, 0, 2] : vector<8x4x16xf32> -> vector<4x8x16xf32>
    %10 = vector.shape_cast %6 : vector<8x64xf32> to vector<8x4x16xf32>
    %11 = tpu.transpose %10, [1, 0, 2] : vector<8x4x16xf32> -> vector<4x8x16xf32>
    %12 = vector.shape_cast %7 : vector<8x64xf32> to vector<8x4x16xf32>
    %13 = tpu.transpose %12, [1, 0, 2] : vector<8x4x16xf32> -> vector<4x8x16xf32>
    "tpu.trace_start"() <{level = 10 : i32, message = "hqd,hkd->hqk"}> : () -> ()
    %cst_6 = arith.constant dense<0.000000e+00> : vector<4x8x8xf32>
    %14 = tpu.matmul %9, %11, %cst_6 {dimension_numbers = #tpu.dot_dimension_numbers<[2], [2], [1], [1], [0, 0, 0, 1, 1, 1], [0], [0]>} : vector<4x8x16xf32>, vector<4x8x16xf32>, vector<4x8x8xf32> -> vector<4x8x8xf32>
    "tpu.trace_stop"() : () -> ()
    %cst_7 = arith.constant 1.250000e-01 : f32
    %15 = vector.broadcast %cst_7 : f32 to vector<4x8x8xf32>
    %16 = arith.mulf %14, %15 : vector<4x8x8xf32>
    %c8_i32 = arith.constant 8 : i32
    %17 = arith.muli %arg1, %c8_i32 : i32
    %18 = tpu.iota {dimensions = array<i32: 0>} : vector<8x8xi32>
    %19 = vector.broadcast %17 : i32 to vector<8x8xi32>
    %20 = arith.addi %19, %18 : vector<8x8xi32>
    %21 = tpu.iota {dimensions = array<i32: 1>} : vector<8x8xi32>
    %22 = arith.cmpi sgt, %21, %20 : vector<8x8xi32>
    %23 = vector.shape_cast %22 : vector<8x8xi1> to vector<1x8x8xi1>
    %cst_8 = arith.constant 0xFF800000 : f32
    %24 = vector.shape_cast %23 : vector<1x8x8xi1> to vector<1x8x8xi1>
    %25 = vector.broadcast %24 : vector<1x8x8xi1> to vector<4x8x8xi1>
    %26 = vector.broadcast %cst_8 : f32 to vector<4x8x8xf32>
    %27 = arith.select %25, %26, %16 : vector<4x8x8xi1>, vector<4x8x8xf32>
    %cst_9 = arith.constant dense<0xFF800000> : vector<4x8xf32>
    %28 = vector.multi_reduction <maximumf>, %27, %cst_9 [2] : vector<4x8x8xf32> to vector<4x8xf32>
    %29 = vector.shape_cast %28 : vector<4x8xf32> to vector<4x8x1xf32>
    %30 = vector.broadcast %29 : vector<4x8x1xf32> to vector<4x8x8xf32>
    %31 = arith.subf %27, %30 : vector<4x8x8xf32>
    %32 = math.exp %31 : vector<4x8x8xf32>
    %cst_10 = arith.constant dense<0.000000e+00> : vector<4x8xf32>
    %33 = vector.multi_reduction <add>, %32, %cst_10 [2] : vector<4x8x8xf32> to vector<4x8xf32>
    %34 = vector.shape_cast %33 : vector<4x8xf32> to vector<4x8x1xf32>
    %35 = vector.broadcast %34 : vector<4x8x1xf32> to vector<4x8x8xf32>
    %36 = arith.divf %32, %35 : vector<4x8x8xf32>
    "tpu.trace_start"() <{level = 10 : i32, message = "hqk,hkd->hqd"}> : () -> ()
    %cst_11 = arith.constant dense<0.000000e+00> : vector<4x8x16xf32>
    %37 = tpu.matmul %36, %13, %cst_11 {dimension_numbers = #tpu.dot_dimension_numbers<[2], [1], [1], [2], [0, 0, 0, 1, 1, 2], [0], [0]>} : vector<4x8x8xf32>, vector<4x8x16xf32>, vector<4x8x16xf32> -> vector<4x8x16xf32>
    "tpu.trace_stop"() : () -> ()
    %38 = tpu.transpose %37, [1, 0, 2] : vector<4x8x16xf32> -> vector<8x4x16xf32>
    %39 = vector.shape_cast %38 : vector<8x4x16xf32> to vector<8x64xf32>
    %cst_12 = arith.constant dense<0.000000e+00> : vector<8x64xf32>
    %40 = tpu.matmul %39, %3, %cst_12 {dimension_numbers = #tpu.dot_dimension_numbers<[1], [0], [0], [1], [0, 0, 1, 1], [], []>} : vector<8x64xf32>, vector<64x64xf32>, vector<8x64xf32> -> vector<8x64xf32>
    %c0_13 = arith.constant 0 : index
    %c0_14 = arith.constant 0 : index
    %c0_15 = arith.constant 0 : index
    %41 = vector.load %arg5[%c0_13, %c0_14, %c0_15] : memref<1x8x64xf32, #tpu.memory_space<vmem>>, vector<1x8x64xf32>
    %42 = vector.shape_cast %41 : vector<1x8x64xf32> to vector<8x64xf32>
    %43 = vector.shape_cast %40 : vector<8x64xf32> to vector<1x8x64xf32>
    tpu.vector_store %arg5[%c0_13, %c0_14, %c0_15], %43 {strides = array<i32>} : memref<1x8x64xf32, #tpu.memory_space<vmem>>, vector<1x8x64xf32>,
    return
  }
  func.func @transform_0(%arg0: i32, %arg1: i32) -> (i32, i32, i32) {
    %c0_i32 = arith.constant 0 : i32
    %c0_i32_0 = arith.constant 0 : i32
    %c0_i32_1 = arith.constant 0 : i32
    return %arg0, %c0_i32, %c0_i32_0 : i32, i32, i32
  }
  func.func @transform_1(%arg0: i32, %arg1: i32) -> (i32, i32) {
    %c0_i32 = arith.constant 0 : i32
    %c0_i32_0 = arith.constant 0 : i32
    %c0_i32_1 = arith.constant 0 : i32
    return %c0_i32, %c0_i32_0 : i32, i32
  }
  func.func @transform_2(%arg0: i32, %arg1: i32) -> (i32, i32) {
    %c0_i32 = arith.constant 0 : i32
    %c0_i32_0 = arith.constant 0 : i32
    %c0_i32_1 = arith.constant 0 : i32
    return %c0_i32, %c0_i32_0 : i32, i32
  }
  func.func @transform_3(%arg0: i32, %arg1: i32) -> (i32, i32, i32) {
    %c0_i32 = arith.constant 0 : i32
    %c0_i32_0 = arith.constant 0 : i32
    return %arg0, %arg1, %c0_i32 : i32, i32, i32
  }
}

</mosaic_0001>

<bundles_post_ra>
// kernel: tpu_custom_call.1
= control target key start
LH: loop header
LB: loop body
LE: loop exit
PB: predicated region body
PF: predicated region fallthrough
CT: control target
= control target key end

     0   :  { %8 = vsyncpa [#allocation3], 0  ;;  %s1972_s0 = inlined_call_operand.hbm [shape: f32[2,8,32], index: 0, kind: input, shape index: {}]   ;;  %s1973_s1 = inlined_call_operand.hbm [shape: f32[32,192], index: 1, kind: input, shape index: {}]   ;;  %s1974_s2 = inlined_call_operand.hbm [shape: f32[64,64], index: 2, kind: input, shape index: {}]   ;;  %s1975_s3 = inlined_call_operand.hbm [shape: f32[2,8,64], index: 3, kind: output, shape index: {}]  }
   0x1   :  { %10 = vsyncpa [#allocation3 + $0x1], 0 }
   0x2   :  { %11 = vsyncpa [#allocation6], 0 }
   0x3   :  { %12 = vsyncpa [#allocation4], 0 }
   0x4   :  { %14 = vsyncpa [#allocation4 + $0x1], 0  ;;  %s1594_s12 = smov 0   ;;  %s1596_s13 = smov 0  }
   0x5   :  { %s1598_s14 = smov 0   ;;  %s1600_s15 = smov 0  }
   0x6   :  { %s1602_s16 = smov 0   ;;  %s1604_s17 = smov 0  }
   0x7 LB: > { %s1237_s18 = sadd.s32 4294967295, %s1557_s17   ;;  %p1239_p0 = scmp.ge.s32.totalorder %s1557_s17, 1  ;;  %s1557_s17 = sphi %s1604_s17, %s20_s17   ;;  %s1553_s16 = sphi %s1602_s16, %s1985_s16   ;;  %s1549_s15 = sphi %s1600_s15, %s1984_s15   ;;  %s1545_s14 = sphi %s1598_s14, %s1983_s14   ;;  %s1541_s13 = sphi %s1596_s13, %s1982_s13   ;;  %s1537_s12 = sphi %s1594_s12, %s1981_s12  }
   0x8   : > { %p1628_p1 = scmp.eq.s32.totalorder %s1237_s18, 0  ;;  %p133_p2 = scmp.lt.s32.totalorder %s1557_s17, 3 }
   0x9   : > { %s144_s22 = sshll.u32 %s1973_s1, 4  ;;  %s1559_s24 = smov [#allocation5]   ;;  %s145_s22 = int_to_ptr.hbm [resolvable:$true] %s144_s22 }
   0xa   : > { %p1636_p3 = pnand %p1239_p0, %p133_p2  ;;  %s146_s25 = sshll.u32 %s1559_s24, 4  ;;  %s147_s25 = int_to_ptr.vmem [resolvable:$true] %s146_s25 }
   0xb   : > { %p1242_p6 = scmp.ge.s32.totalorder %s1557_s17, 2  ;;  %s158_s28 = sshll.u32 %s1974_s2, 4  ;;  %s159_s28 = int_to_ptr.hbm [resolvable:$true] %s158_s28 }
   0xc   : > { %p1281_p4 = pneg %p1636_p3  ;;  %s1560_s29 = smov 256  }
   0xd   : > { %s1561_s30 = smov 16   ;;  %s1562_s4 = smov [#allocation7]  }
   0xe   : > { %p1282_p5 = pnand %p1281_p4, %p1628_p1  ;;  %s160_s5 = sshll.u32 %s1562_s4, 4  ;;  %s161_s5 = int_to_ptr.vmem [resolvable:$true] %s160_s5 }
   0xf   : > { %s1563_s6 = smov 128   ;;  %s1564_s7 = smov 8  }
  0x10   : > { %1284 = dma.hbm_to_vmem [thread:$0]  (!%p1282_p5), %s145_s22, 1024, %s147_s25, [#allocation6], %s1560_s29, %s1560_s29, %s1561_s30  }
  0x11   : > { %1287 = dma.hbm_to_vmem [thread:$0]  (!%p1282_p5), %s159_s28, 1024, %s161_s5, [#allocation6], %s1563_s6, %s1563_s6, %s1564_s7  }
  0x12   : > { %s32_s8 = sadd.s32 1, %s1553_s16  ;;  %s1238_s9 = sadd.s32 4294967294, %s1557_s17  }
  0x13   : > { %p34_p7 = scmp.ge.s32.totalorder %s32_s8, 2  ;;  %s39_s10 = sadd.s32 1, %s1545_s14 }
  0x14   : > { %p46_p8 = scmp.ne.s32.totalorder %s1545_s14, %s1541_s13  ;;  %p47_p9 = scmp.eq.s32.totalorder %s1557_s17, 0 }
  0x15   : > { %s1987_s8 = smov (%p34_p7, %s32_s8), 0  ;;  %p52_p10 = scmp.ne.s32.totalorder %s1541_s13, %s1537_s12 }
  0x16   : > { %s36_s11 = ssub.s32 %s1553_s16, %s1987_s8  ;;  %p120_p11 = scmp.eq.s32.totalorder %s1237_s18, 1 }
  0x17   : > { %p37_p12 = scmp.eq.s32.totalorder %s36_s11, 0  ;;  %p1664_p13 = por %p1628_p1, %p52_p10 }
  0x18   : > { %p1668_p0 = por %p120_p11, %p46_p8  ;;  %p126_p2 = scmp.eq.s32.totalorder %s1238_s9, 1 }
  0x19   : > { %s1673_s22 = scalar_select %p37_p12, %s1545_s14, %s39_s10  }
  0x1a   : > { %p48_p4 = por %p47_p9, %p46_p8  ;;  %p1675_p5 = por %p126_p2, %p52_p10 }
  0x1b   : > { %s174_s25 = sand.u32 1, %s1545_s14   ;;  %s1244_s18 = sshll.u32 %s1553_s16, 3 }
  0x1c   : > { %p1298_p7 = scmp.lt.s32.totalorder %s1557_s17, 2  ;;  %s1243_s26 = sshll.u32 %s174_s25, 3 }
  0x1d   : > { %s182_s29 = scalar_lea.hbm %s1972_s0, %s1244_s18  ;;  %s178_s4 = scalar_lea.vmem [#allocation2], %s1243_s26 }
  0x1e   : > { %s184_s30 = sshll.u32 %s182_s29, 4  ;;  %s186_s5 = sshll.u32 %s178_s4, 4  ;;  %s185_s30 = int_to_ptr.hbm [resolvable:$true] %s184_s30  ;;  %s187_s5 = int_to_ptr.vmem [resolvable:$true] %s186_s5 }
  0x1f   : > { %p1289_p11 = pnand %p1298_p7, %p48_p4  ;;  %s175_s6 = scalar_lea.sflag [#allocation3], %s174_s25 }
  0x20   : > { %195 = sbr.rel (%p1636_p3) target bundleno = 1241 (0x4d9), region = 32  ;;  %s1688_s7 = sand.u32 (!%p1636_p3), 1, %s1541_s13  }
  0x21   : > { %1291 = dma.hbm_to_vmem [thread:$0]  (!%p1289_p11), %s185_s30, 128, %s187_s5, %s175_s6  }
  0x22   : > { %s1246_s9 = sshll.u32 (!%p1636_p3), %s1688_s7, 3  ;;  %s198_s10 = scalar_lea.sflag (!%p1636_p3), [#allocation3], %s1688_s7 }
  0x23   : > { %s201_s11 = scalar_lea.vmem (!%p1636_p3), [#allocation2], %s1246_s9 }
  0x25   : > { %1524 = dma.done.wait (%p1664_p13), %s198_s10, 128  }
  0x26   : > { %1526 = vsyncadd (%p1664_p13), %s198_s10, 4294967168 }
  0x27   : > { %1528 = dma.done.wait (%p1628_p1), [#allocation6], 2048  }
  0x28   : > { %1530 = vsyncadd (%p1628_p1), [#allocation6], 4294965248  ;;  %v242_v0 = vld [vmem:[#allocation5 + $0x30] sm:$0xff]  ;;  %v240_v1 = vld [vmem:[#allocation5 + $0x20] sm:$0xff]  ;;  %vm252_vm0 = vcmask 261120   ;;  %s1565_s23 = smov 80  }
  0x29   : > { %268 = vmatpush.msra.mxu1 %v242_v0  ;;  %v238_v2 = vld [vmem:[#allocation5 + $0x10] sm:$0xff]  ;;  %v236_v3 = vld [vmem:[#allocation5] sm:$0xff]  ;;  %s1566_s19 = smov 112   ;;  %s1567_s20 = smov 64   ;;  %v1569_v6 = vmov 1983009808  }
  0x2a   : > { %v1702_v4 = vld [vmem:[%s201_s11] sm:$0xff]  ;;  %s1568_s25 = smov 96   ;;  %v312_v7 = vunpack.c.l.s4 %v1569_v6  ;;  %vm307_vm1 = vcmask 1047556   ;;  %v1570_v15 = vmov 1934713408   ;;  %vm659_vm2 = vcmask 130048  }
  0x2b   : > { %269 = vmatpush.msra.mxu1 %v240_v1  ;;  %v336_v16 = vunpack.c.l.s4 %v1570_v15  ;;  %vm782_vm4 = vcmask 64512   ;;  %s1571_s18 = smov 48   ;;  %s1572_s26 = smov 32  }
  0x2c   : > { %v1709_v12 = vunpack.c.0.s8 %v312_v7  ;;  %s1573_s27 = smov 16   ;;  %s1266_s28 = sshll.u32 %s1549_s15, 3 }
  0x2d   : > { %270 = vmatpush.msra.mxu1 %v238_v2  ;;  %v1715_v21 = vunpack.c.0.s8 %v336_v16  ;;  %s1134_s4 = scalar_lea.hbm %s1975_s3, %s1266_s28  ;;  %s234_s5 = scalar_lea.vmem [#allocation8], %s1246_s9 }
  0x2e   : > { %s1136_s6 = sshll.u32 %s234_s5, 4  ;;  %s1138_s10 = sshll.u32 %s1134_s4, 4  ;;  %s1137_s6 = int_to_ptr.vmem [resolvable:$true] %s1136_s6  ;;  %s1139_s10 = int_to_ptr.hbm [resolvable:$true] %s1138_s10 }
  0x2f   : > { %271 = vmatpush.msra.mxu1 %v236_v3  ;;  %s1123_s11 = scalar_lea.sflag [#allocation4], %s1688_s7 }
  0x30   : > { %1250 = vmatmul.msk.f32.vlgmr.msra.gmra.mxu1 %vm252_vm0, %v1702_v4 }
  0xad   : > { %v273_v5 = vpop.f32.mrf.mxu1 }
  0xae   : > { %303 = vrot.lane.b32.xlu1 %v273_v5, %s1565_s23  ;;  %297 = vrot.lane.b32.xlu0 %v273_v5, %s1566_s19  ;;  %v309_v18 = vrot.slane %v273_v5, 4 }
  0xb6   : > { %417 = vrot.lane.b32.xlu1 %v273_v5, %s1567_s20  ;;  %300 = vrot.lane.b32.xlu0 %v273_v5, %s1568_s25 }
 0x120   : > { %v304_v8 = vpop.permute.xlu1 %303  ;;  %v298_v9 = vpop.permute.xlu0 %297 }
 0x121   : > { %v319_v10 = vrot.slane %v304_v8, 4  ;;  %v321_v11 = vrot.slane %v298_v9, 4  ;;  %423 = vrot.lane.b32.xlu0 %v304_v8, %s1567_s20  ;;  %419 = vrot.lane.b32.xlu2 %v298_v9, %s1567_s20 }
 0x123   : > { %v320_v13 = vsel %vm307_vm1, %v319_v10, %v298_v9  ;;  %v322_v14 = vsel %vm307_vm1, %v304_v8, %v321_v11 }
 0x124   : > { %v330_v17 = vperm.slane %v322_v14, %v1709_v12  ;;  %v326_v19 = vperm.slane %v320_v13, %v1709_v12 }
 0x126   : > { %v343_v24 = vrot.slane %v330_v17, 4  ;;  %v331_v27 = vrot.slane %v326_v19, 4 }
 0x128   : > { %v301_v20 = vpop.permute.xlu0 %300  ;;  %v418_v16 = vpop.permute.xlu1 %417 }
 0x129   : > { %v306_v22 = vrot.slane %v301_v20, 4  ;;  %v310_v23 = vsel %vm307_vm1, %v301_v20, %v309_v18  ;;  %421 = vrot.lane.b32.xlu2 %v301_v20, %s1567_s20  ;;  %v431_v18 = vrot.slane %v418_v16, 4 }
 0x12a   : > { %v318_v25 = vperm.slane %v310_v23, %v1709_v12 }
 0x12b   : > { %v308_v26 = vsel %vm307_vm1, %v306_v22, %v273_v5 }
 0x12c   : > { %v314_v28 = vperm.slane %v308_v26, %v1709_v12  ;;  %v344_v29 = vsel %vm307_vm1, %v343_v24, %v318_v25  ;;  %v345_v30 = vrot.slane %v318_v25, 4 }
 0x12d   : > { %v350_v31 = vperm.slane %v344_v29, %v1715_v21 }
 0x12e   : > { %v332_v32 = vsel %vm307_vm1, %v331_v27, %v314_v28  ;;  %v333_v33 = vrot.slane %v314_v28, 4  ;;  %v346_v34 = vsel %vm307_vm1, %v330_v17, %v345_v30 }
 0x12f   : > { %v338_v35 = vperm.slane %v332_v32, %v1715_v21  ;;  %v354_v36 = vperm.slane %v346_v34, %v1715_v21  ;;  %v359_v39 = vrot.slane %v350_v31, 4 }
 0x130   : > { %v334_v37 = vsel %vm307_vm1, %v326_v19, %v333_v33 }
 0x131   : > { %v342_v38 = vperm.slane %v334_v37, %v1715_v21  ;;  %v361_v40 = vrot.slane %v354_v36, 4  ;;  %v355_v41 = vrot.slane %v338_v35, 4  ;;  %v360_v48 = vsel %vm307_vm1, 0.0, %v359_v39  ;;  %v243_v36 = vld [vmem:[#allocation5 + $0x38] sm:$0xff]  ;;  %v241_v37 = vld [vmem:[#allocation5 + $0x28] sm:$0xff] }
 0x132   : > { %288 = vmatpush.msrb.mxu1 %v243_v36 }
 0x133   : > { %v357_v42 = vrot.slane %v342_v38, 4  ;;  %v362_v43 = vsel %vm307_vm1, 0.0, %v361_v40  ;;  %v374_v44 = vsel %vm307_vm1, %v361_v40, %v350_v31  ;;  %v356_v54 = vsel %vm307_vm1, 0.0, %v355_v41 }
 0x134   : > { %v379_v45 = vrot.slane %v362_v43, 4  ;;  %v378_v46 = vperm.slane %v374_v44, %v1709_v12  ;;  %289 = vmatpush.msrb.mxu1 %v241_v37 }
 0x135   : > { %v358_v47 = vsel %vm307_vm1, 0.0, %v357_v42  ;;  %v363_v49 = vsel %vm307_vm1, %v357_v42, %v338_v35  ;;  %v239_v42 = vld [vmem:[#allocation5 + $0x18] sm:$0xff] }
 0x136   : > { %v380_v50 = vsel %vm307_vm1, %v379_v45, %v360_v48  ;;  %v367_v51 = vperm.slane %v363_v49, %v1709_v12  ;;  %v368_v52 = vrot.slane %v358_v47, 4  ;;  %v399_v53 = vrot.slane %v378_v46, 4  ;;  %v237_v47 = vld [vmem:[#allocation5 + $0x8] sm:$0xff]  ;;  %290 = vmatpush.msrb.mxu1 %v239_v42 }
 0x137   : > { %v384_v55 = vperm.slane %v380_v50, %v1709_v12 }
 0x138   : > { %v369_v56 = vsel %vm307_vm1, %v368_v52, %v356_v54  ;;  %v387_v57 = vrot.slane %v367_v51, 4  ;;  %291 = vmatpush.msrb.mxu1 %v237_v47 }
 0x139   : > { %v373_v58 = vperm.slane %v369_v56, %v1709_v12  ;;  %v397_v59 = vrot.slane %v384_v55, 4  ;;  %v400_v60 = vsel %vm307_vm1, %v384_v55, %v399_v53  ;;  %1251 = vmatmul.msk.f32.vlgmr.msrb.gmra.mxu1 %vm252_vm0, %v1702_v4 }
 0x13a   : > { %v408_v61 = vperm.slane %v400_v60, %v1715_v21 }
 0x13b   : > { %v385_v62 = vrot.slane %v373_v58, 4  ;;  %v398_v63 = vsel %vm307_vm1, %v397_v59, %v378_v46  ;;  %v388_v0 = vsel %vm307_vm1, %v373_v58, %v387_v57 }
 0x13c   : > { %v404_v1 = vperm.slane %v398_v63, %v1715_v21  ;;  %v396_v2 = vperm.slane %v388_v0, %v1715_v21  ;;  %v413_v3 = vrot.slane %v408_v61, 4 }
 0x13d   : > { %v386_v5 = vsel %vm307_vm1, %v385_v62, %v367_v51 }
 0x13e   : > { %v392_v6 = vperm.slane %v386_v5, %v1715_v21  ;;  %v409_v7 = vrot.slane %v404_v1, 4  ;;  %v1750_v8 = vsel %vm307_vm1, %v413_v3, %v396_v2  ;;  %v415_v9 = vrot.slane %v396_v2, 4 }
 0x140   : > { %v1753_v10 = vsel %vm307_vm1, %v409_v7, %v392_v6  ;;  %v411_v11 = vrot.slane %v392_v6, 4  ;;  %v1756_v13 = vsel %vm307_vm1, %v408_v61, %v415_v9 }
 0x142   : > { %v1759_v14 = vsel %vm307_vm1, %v404_v1, %v411_v11 }
 0x17b   : > { %v420_v15 = vpop.permute.xlu2 %419 }
 0x17c   : > { %v443_v24 = vrot.slane %v420_v15, 4 }
 0x183   : > { %v422_v17 = vpop.permute.xlu2 %421 }
 0x184   : > { %v429_v19 = vrot.slane %v422_v17, 4  ;;  %v432_v20 = vsel %vm307_vm1, %v422_v17, %v431_v18 }
 0x185   : > { %v440_v23 = vperm.slane %v432_v20, %v1709_v12 }
 0x186   : > { %v430_v22 = vsel %vm307_vm1, %v429_v19, %v418_v16 }
 0x187   : > { %v436_v25 = vperm.slane %v430_v22, %v1709_v12  ;;  %v467_v29 = vrot.slane %v440_v23, 4 }
 0x189   : > { %v455_v32 = vrot.slane %v436_v25, 4 }
 0x193   : > { %v424_v26 = vpop.permute.xlu0 %423 }
 0x194   : > { %v441_v27 = vrot.slane %v424_v26, 4  ;;  %v444_v28 = vsel %vm307_vm1, %v424_v26, %v443_v24 }
 0x195   : > { %v452_v30 = vperm.slane %v444_v28, %v1709_v12  ;;  %v769_v28 = vlaneseq }
 0x196   : > { %v442_v31 = vsel %vm307_vm1, %v441_v27, %v420_v15 }
 0x197   : > { %v448_v33 = vperm.slane %v442_v31, %v1709_v12  ;;  %v465_v34 = vrot.slane %v452_v30, 4  ;;  %v468_v35 = vsel %vm307_vm1, %v452_v30, %v467_v29  ;;  %v770_v29 = vshrl.u32 %v769_v28, 7 }
 0x198   : > { %v476_v38 = vperm.slane %v468_v35, %v1715_v21  ;;  %v774_v30 = vand.u32 127, %v769_v28 }
 0x199   : > { %v453_v39 = vrot.slane %v448_v33, 4  ;;  %v456_v40 = vsel %vm307_vm1, %v448_v33, %v455_v32  ;;  %v466_v41 = vsel %vm307_vm1, %v465_v34, %v440_v23 }
 0x19a   : > { %v464_v43 = vperm.slane %v456_v40, %v1715_v21  ;;  %v472_v44 = vperm.slane %v466_v41, %v1715_v21  ;;  %v483_v45 = vrot.slane %v476_v38, 4  ;;  %vm775_vm3 = vcmp.gt.s32.totalorder %v774_v30, %v770_v29 }
 0x19b   : > { %v454_v46 = vsel %vm307_vm1, %v453_v39, %v436_v25 }
 0x19c   : > { %v460_v48 = vperm.slane %v454_v46, %v1715_v21  ;;  %v479_v49 = vrot.slane %v464_v43, 4  ;;  %v481_v50 = vrot.slane %v472_v44, 4  ;;  %v484_v51 = vsel %vm307_vm1, 0.0, %v483_v45 }
 0x19d   : > { %v496_v52 = vsel %vm307_vm1, %v483_v45, %v472_v44  ;;  %v501_v53 = vrot.slane %v484_v51, 4 }
 0x19e   : > { %v477_v54 = vrot.slane %v460_v48, 4  ;;  %v480_v55 = vsel %vm307_vm1, 0.0, %v479_v49  ;;  %v482_v56 = vsel %vm307_vm1, 0.0, %v481_v50  ;;  %v485_v57 = vsel %vm307_vm1, %v479_v49, %v460_v48 }
 0x19f   : > { %v490_v58 = vrot.slane %v480_v55, 4  ;;  %v489_v59 = vperm.slane %v485_v57, %v1709_v12  ;;  %v500_v60 = vperm.slane %v496_v52, %v1709_v12  ;;  %v502_v61 = vsel %vm307_vm1, %v501_v53, %v482_v56 }
 0x1a0   : > { %v478_v62 = vsel %vm307_vm1, 0.0, %v477_v54  ;;  %v506_v63 = vperm.slane %v502_v61, %v1709_v12 }
 0x1a1   : > { %v491_v0 = vsel %vm307_vm1, %v490_v58, %v478_v62  ;;  %v509_v1 = vrot.slane %v489_v59, 4  ;;  %v521_v2 = vrot.slane %v500_v60, 4 }
 0x1a2   : > { %v495_v3 = vperm.slane %v491_v0, %v1709_v12  ;;  %v519_v5 = vrot.slane %v506_v63, 4 }
 0x1a3   : > { %v522_v6 = vsel %vm307_vm1, %v506_v63, %v521_v2 }
 0x1a4   : > { %v507_v7 = vrot.slane %v495_v3, 4  ;;  %v520_v9 = vsel %vm307_vm1, %v519_v5, %v500_v60  ;;  %v510_v11 = vsel %vm307_vm1, %v495_v3, %v509_v1  ;;  %v530_v4 = vperm.slane %v522_v6, %v1715_v21 }
 0x1a5   : > { %v526_v15 = vperm.slane %v520_v9, %v1715_v21  ;;  %v518_v16 = vperm.slane %v510_v11, %v1715_v21 }
 0x1a6   : > { %v508_v17 = vsel %vm307_vm1, %v507_v7, %v489_v59  ;;  %v535_v18 = vrot.slane %v530_v4, 4 }
 0x1a7   : > { %v514_v19 = vperm.slane %v508_v17, %v1715_v21  ;;  %v531_v20 = vrot.slane %v526_v15, 4  ;;  %v537_v22 = vrot.slane %v518_v16, 4 }
 0x1a8   : > { %v536_v25 = vsel %vm307_vm1, %v535_v18, %v518_v16 }
 0x1a9   : > { %v532_v23 = vsel %vm307_vm1, %v531_v20, %v514_v19  ;;  %v533_v24 = vrot.slane %v514_v19, 4  ;;  %v538_v27 = vsel %vm307_vm1, %v530_v4, %v537_v22 }
 0x1aa   : > { %1252 = vmatpush.xpose.msk.msra.mxu2 %vm659_vm2, %v532_v23 }
 0x1ab   : > { %v534_v26 = vsel %vm307_vm1, %v526_v15, %v533_v24 }
 0x1ac   : > { %1254 = vmatpush.xpose.msk.msra.mxu3 %vm659_vm2, %v534_v26 }
 0x1ad   : > { %1253 = vmatmul.msk.f32.vlgmr.msra.gmra.mxu2 %vm659_vm2, %v1753_v10 }
 0x1ae   : > { %1256 = vmatpush.xpose.msk.msrb.mxu2 %vm659_vm2, %v536_v25 }
 0x1af   : > { %1255 = vmatmul.msk.f32.vlgmr.msra.gmra.mxu3 %vm659_vm2, %v1759_v14 }
 0x1b0   : > { %1258 = vmatpush.xpose.msk.msrb.mxu3 %vm659_vm2, %v538_v27 }
 0x1b5   : > { %1257 = vmatmul.msk.f32.vlgmr.msrb.gmra.mxu2 %vm659_vm2, %v1750_v8 }
 0x1b6   : > { %v293_v43 = vpop.f32.mrf.mxu1 }
 0x1b7   : > { %1259 = vmatmul.msk.f32.vlgmr.msrb.gmra.mxu3 %vm659_vm2, %v1756_v13  ;;  %v551_v3 = vrot.slane %v293_v43, 4 }
 0x230   : > { %v683_v31 = vpop.f32.mrf.mxu2 }
 0x231   : > { %v764_v32 = vmul.f32 0.125, %v683_v31 }
 0x232   : > { %v709_v33 = vpop.f32.mrf.mxu3 }
 0x233   : > { %v765_v10 = vmul.f32 0.125, %v709_v33  ;;  %v778_v34 = vsel %vm775_vm3, -inf, %v764_v32 }
 0x234   : > { %v783_v35 = vsel %vm782_vm4, %v778_v34, -inf }
 0x235   : > { %784 = vmax.xlane.f32.xlu0 %v783_v35  ;;  %v779_v14 = vsel %vm775_vm3, -inf, %v765_v10 }
 0x236   : > { %v786_v8 = vsel %vm782_vm4, %v779_v14, -inf }
 0x237   : > { %787 = vmax.xlane.f32.xlu2 %v786_v8 }
 0x238   : > { %v735_v13 = vpop.f32.mrf.mxu2 }
 0x239   : > { %v766_v36 = vmul.f32 0.125, %v735_v13 }
 0x23a   : > { %v761_v37 = vpop.f32.mrf.mxu3 }
 0x23b   : > { %v767_v38 = vmul.f32 0.125, %v761_v37  ;;  %v780_v39 = vsel %vm775_vm3, -inf, %v766_v36 }
 0x23c   : > { %v789_v40 = vsel %vm782_vm4, %v780_v39, -inf }
 0x23d   : > { %790 = vmax.xlane.f32.xlu1 %v789_v40  ;;  %v781_v41 = vsel %vm775_vm3, -inf, %v767_v38 }
 0x23e   : > { %v792_v42 = vsel %vm782_vm4, %v781_v41, -inf }
 0x23f   : > { %793 = vmax.xlane.f32.xlu2 %v792_v42 }
 0x249   : > { %546 = vrot.lane.b32.xlu0 %v293_v43, %s1565_s23  ;;  %s1485_s23 = sshra.s32 %s1139_s10, 4  ;;  %s1486_s23 = int_to_ptr.hbm [resolvable:$true] %s1485_s23 }
 0x24a   : > { %p1492_p9 = scmp.lt.s32.totalorder %s1486_s23, %s1975_s3 }
 0x256   : > { %540 = vrot.lane.b32.xlu1 %v293_v43, %s1566_s19  ;;  %s1487_s19 = scalar_lea.hbm %s1486_s23, 8 }
 0x257   : > { %543 = vrot.lane.b32.xlu2 %v293_v43, %s1568_s25  ;;  %p1488_p1 = scmp.ne.s32.totalorder %s1486_s23, %s1487_s19  ;;  %s1491_s25 = scalar_lea.hbm %s1975_s3, 16 }
 0x258   : > { %p1493_p10 = scmp.lt.s32.totalorder %s1491_s25, %s1487_s19 }
 0x259   : > { %p1489_p3 = pnand %p1488_p1, %p1668_p0 }
 0x25a   : > { %p1494_p12 = por %p1493_p10, %p1492_p9 }
 0x25b   : > { %p1490_p8 = pneg %p1489_p3 }
 0x25d   : > { %p1495_p13 = pnand %p1494_p12, %p1490_p8 }
 0x2a8   : > { %v785_v44 = vpop.xlane.xlu0 %784 }
 0x2a9   : > { %v795_v45 = vsub.f32 %v778_v34, %v785_v44 }
 0x2aa   : > { %v788_v46 = vpop.xlane.xlu2 %787 }
 0x2ab   : > { %v799_v47 = vmul.f32 1.442695, %v795_v45  ;;  %v796_v52 = vsub.f32 %v779_v14, %v788_v46 }
 0x2ad   : > { %1365 = vpow2.f32 %v799_v47  ;;  %v801_v57 = vmul.f32 1.442695, %v796_v52 }
 0x2b0   : > { %v791_v48 = vpop.xlane.xlu1 %790 }
 0x2b1   : > { %v797_v49 = vsub.f32 %v780_v39, %v791_v48 }
 0x2b2   : > { %v794_v50 = vpop.xlane.xlu2 %793 }
 0x2b3   : > { %v1826_v51 = vpop.eup %1365  ;;  %v803_v53 = vmul.f32 1.442695, %v797_v49  ;;  %v798_v54 = vsub.f32 %v781_v41, %v794_v50 }
 0x2b4   : > { %v807_v55 = vsel %vm782_vm4, %v1826_v51, 0.0 }
 0x2b5   : > { %1367 = vpow2.f32 %v803_v53  ;;  %v805_v56 = vmul.f32 1.442695, %v798_v54  ;;  %808 = vadd.xlane.f32.xlu2 %v807_v55 }
 0x2b7   : > { %1369 = vpow2.f32 %v805_v56 }
 0x2b8   : > { %1371 = vpow2.f32 %v801_v57 }
 0x2ba   : > { %v544_v59 = vpop.permute.xlu2 %543 }
 0x2bb   : > { %v1830_v58 = vpop.eup %1367  ;;  %v549_v63 = vrot.slane %v544_v59, 4  ;;  %v547_v1 = vpop.permute.xlu0 %546  ;;  %v552_v6 = vsel %vm307_vm1, %v544_v59, %v551_v3 }
 0x2bc   : > { %v813_v60 = vsel %vm782_vm4, %v1830_v58, 0.0  ;;  %v561_v7 = vrot.slane %v547_v1, 4  ;;  %v560_v11 = vperm.slane %v552_v6, %v1709_v12 }
 0x2bd   : > { %v1834_v61 = vpop.eup %1369  ;;  %814 = vadd.xlane.f32.xlu1 %v813_v60  ;;  %v550_v2 = vsel %vm307_vm1, %v549_v63, %v293_v43 }
 0x2be   : > { %v816_v62 = vsel %vm782_vm4, %v1834_v61, 0.0  ;;  %v1838_v0 = vpop.eup %1371  ;;  %v556_v9 = vperm.slane %v550_v2, %v1709_v12  ;;  %v587_v20 = vrot.slane %v560_v11, 4 }
 0x2bf   : > { %817 = vadd.xlane.f32.xlu0 %v816_v62  ;;  %v810_v5 = vsel %vm782_vm4, %v1838_v0, 0.0 }
 0x2c0   : > { %v575_v17 = vrot.slane %v556_v9, 4 }
 0x2c5   : > { %811 = vadd.xlane.f32.xlu1 %v810_v5 }
 0x2c8   : > { %v541_v4 = vpop.permute.xlu1 %540 }
 0x2c9   : > { %v562_v15 = vsel %vm307_vm1, %v561_v7, %v541_v4  ;;  %v563_v16 = vrot.slane %v541_v4, 4 }
 0x2ca   : > { %v568_v18 = vperm.slane %v562_v15, %v1709_v12 }
 0x2cb   : > { %v564_v19 = vsel %vm307_vm1, %v547_v1, %v563_v16 }
 0x2cc   : > { %v572_v22 = vperm.slane %v564_v19, %v1709_v12  ;;  %v573_v23 = vrot.slane %v568_v18, 4  ;;  %v576_v24 = vsel %vm307_vm1, %v568_v18, %v575_v17 }
 0x2cd   : > { %v584_v25 = vperm.slane %v576_v24, %v1715_v21 }
 0x2ce   : > { %v574_v26 = vsel %vm307_vm1, %v573_v23, %v556_v9  ;;  %v585_v27 = vrot.slane %v572_v22, 4  ;;  %v588_v28 = vsel %vm307_vm1, %v572_v22, %v587_v20 }
 0x2cf   : > { %v580_v29 = vperm.slane %v574_v26, %v1715_v21  ;;  %v596_v30 = vperm.slane %v588_v28, %v1715_v21  ;;  %v599_v31 = vrot.slane %v584_v25, 4 }
 0x2d0   : > { %v586_v32 = vsel %vm307_vm1, %v585_v27, %v560_v11 }
 0x2d1   : > { %v592_v33 = vperm.slane %v586_v32, %v1715_v21  ;;  %v597_v10 = vrot.slane %v580_v29, 4  ;;  %v600_v34 = vsel %vm307_vm1, 0.0, %v599_v31  ;;  %v603_v35 = vrot.slane %v596_v30, 4 }
 0x2d2   : > { %v605_v14 = vsel %vm307_vm1, %v599_v31, %v580_v29  ;;  %v610_v8 = vrot.slane %v600_v34, 4 }
 0x2d3   : > { %v598_v13 = vsel %vm307_vm1, 0.0, %v597_v10  ;;  %v601_v36 = vrot.slane %v592_v33, 4  ;;  %v604_v37 = vsel %vm307_vm1, 0.0, %v603_v35  ;;  %v609_v38 = vperm.slane %v605_v14, %v1709_v12 }
 0x2d4   : > { %v611_v39 = vsel %vm307_vm1, %v610_v8, %v598_v13  ;;  %v621_v40 = vrot.slane %v604_v37, 4  ;;  %v616_v41 = vsel %vm307_vm1, %v603_v35, %v592_v33 }
 0x2d5   : > { %v602_v42 = vsel %vm307_vm1, 0.0, %v601_v36  ;;  %v615_v43 = vperm.slane %v611_v39, %v1709_v12  ;;  %v620_v44 = vperm.slane %v616_v41, %v1709_v12  ;;  %v629_v45 = vrot.slane %v609_v38, 4 }
 0x2d6   : > { %v622_v46 = vsel %vm307_vm1, %v621_v40, %v602_v42 }
 0x2d7   : > { %v626_v47 = vperm.slane %v622_v46, %v1709_v12  ;;  %v630_v48 = vsel %vm307_vm1, %v615_v43, %v629_v45  ;;  %v641_v49 = vrot.slane %v620_v44, 4  ;;  %v627_v50 = vrot.slane %v615_v43, 4 }
 0x2d8   : > { %v638_v52 = vperm.slane %v630_v48, %v1715_v21 }
 0x2d9   : > { %v642_v53 = vsel %vm307_vm1, %v626_v47, %v641_v49  ;;  %v628_v54 = vsel %vm307_vm1, %v627_v50, %v609_v38  ;;  %v639_v55 = vrot.slane %v626_v47, 4 }
 0x2da   : > { %v650_v56 = vperm.slane %v642_v53, %v1715_v21  ;;  %v657_v57 = vrot.slane %v638_v52, 4  ;;  %v634_v59 = vperm.slane %v628_v54, %v1715_v21 }
 0x2db   : > { %v640_v60 = vsel %vm307_vm1, %v639_v55, %v620_v44 }
 0x2dc   : > { %v658_v62 = vsel %vm307_vm1, %v650_v56, %v657_v57  ;;  %v646_v63 = vperm.slane %v640_v60, %v1715_v21  ;;  %v653_v1 = vrot.slane %v634_v59, 4  ;;  %v655_v2 = vrot.slane %v650_v56, 4 }
 0x2dd   : > { %966 = vmatpush.msra.mxu3 %v658_v62 }
 0x2de   : > { %v654_v3 = vsel %vm307_vm1, %v646_v63, %v653_v1  ;;  %v656_v5 = vsel %vm307_vm1, %v655_v2, %v638_v52  ;;  %v651_v6 = vrot.slane %v646_v63, 4 }
 0x2df   : > { %920 = vmatpush.msra.mxu1 %v654_v3  ;;  %943 = vmatpush.msra.mxu2 %v656_v5 }
 0x2e0   : > { %v652_v7 = vsel %vm307_vm1, %v651_v6, %v634_v59 }
 0x2e1   : > { %897 = vmatpush.msra.mxu0 %v652_v7 }
 0x328   : > { %v809_v9 = vpop.xlane.xlu2 %808 }
 0x329   : > { %1373 = vrcp.f32 %v809_v9  ;;  %v830_v19 = vand.u32 2147483648, %v809_v9  ;;  %v828_v20 = vand.u32 2147483647, %v809_v9  ;;  %vm824_vm6 = vweird.f32 %v809_v9 }
 0x32b   : > { %v831_v24 = vor.u32 1.1754944e-38, %v830_v19  ;;  %vm829_vm8 = vcmp.eq.f32.partialorder %v828_v20, 8.507059e+37 }
 0x32f   : > { %v1374_v11 = vpop.eup %1373 }
 0x330   : > { %v820_v4 = vmul.f32 %v1374_v11, %v809_v9  ;;  %v815_v15 = vpop.xlane.xlu1 %814  ;;  %vm825_vm5 = vweird.f32 %v1374_v11 }
 0x331   : > { %1375 = vrcp.f32 %v815_v15  ;;  %vm826_vm7 = vmor %vm824_vm6, %vm825_vm5  ;;  %v858_v32 = vand.u32 2147483647, %v815_v15  ;;  %v860_v33 = vand.u32 2147483648, %v815_v15  ;;  %vm854_vm10 = vweird.f32 %v815_v15 }
 0x332   : > { %v821_v16 = vsub.f32 1.0, %v820_v4  ;;  %v818_v17 = vpop.xlane.xlu0 %817 }
 0x333   : > { %1377 = vrcp.f32 %v818_v17  ;;  %v875_v14 = vand.u32 2147483648, %v818_v17  ;;  %v873_v36 = vand.u32 2147483647, %v818_v17  ;;  %vm859_vm13 = vcmp.eq.f32.partialorder %v858_v32, 8.507059e+37 }
 0x334   : > { %v822_v18 = vmul.f32 %v1374_v11, %v821_v16  ;;  %v861_v38 = vor.u32 1.1754944e-38, %v860_v33  ;;  %vm869_vm14 = vweird.f32 %v818_v17 }
 0x335   : > { %v876_v42 = vor.u32 1.1754944e-38, %v875_v14  ;;  %vm874_vm3 = vcmp.eq.f32.partialorder %v873_v36, 8.507059e+37 }
 0x336   : > { %v823_v22 = vadd.f32 %v1374_v11, %v822_v18 }
 0x337   : > { %v1376_v23 = vpop.eup %1375 }
 0x338   : > { %v850_v25 = vmul.f32 %v1376_v23, %v815_v15  ;;  %v812_v26 = vpop.xlane.xlu1 %811  ;;  %v827_v27 = vsel %vm826_vm7, %v1374_v11, %v823_v22  ;;  %vm855_vm9 = vweird.f32 %v1376_v23 }
 0x339   : > { %v1378_v28 = vpop.eup %1377  ;;  %1379 = vrcp.f32 %v812_v26  ;;  %v832_v31 = vsel %vm829_vm8, %v831_v24, %v827_v27  ;;  %vm856_vm12 = vmor %vm854_vm10, %vm855_vm9  ;;  %v845_v47 = vand.u32 2147483648, %v812_v26  ;;  %v843_v49 = vand.u32 2147483647, %v812_v26 }
 0x33a   : > { %v851_v29 = vsub.f32 1.0, %v850_v25  ;;  %v865_v30 = vmul.f32 %v1378_v28, %v818_v17  ;;  %v833_v10 = vmul.f32 %v1826_v51, %v832_v31  ;;  %vm870_vm11 = vweird.f32 %v1378_v28 }
 0x33b   : > { %vm871_vm15 = vmor %vm869_vm14, %vm870_vm11  ;;  %vm839_vm6 = vweird.f32 %v812_v26  ;;  %v846_v53 = vor.u32 1.1754944e-38, %v845_v47  ;;  %vm844_vm8 = vcmp.eq.f32.partialorder %v843_v49, 8.507059e+37 }
 0x33c   : > { %v852_v34 = vmul.f32 %v1376_v23, %v851_v29  ;;  %v866_v35 = vsub.f32 1.0, %v865_v30  ;;  %1260 = vmatmul.msk.f32.vlgmr.msra.gmra.mxu0 %vm782_vm4, %v833_v10 }
 0x33e   : > { %v853_v8 = vadd.f32 %v1376_v23, %v852_v34  ;;  %v867_v13 = vmul.f32 %v1378_v28, %v866_v35 }
 0x33f   : > { %v1380_v37 = vpop.eup %1379 }
 0x340   : > { %v857_v39 = vsel %vm856_vm12, %v1376_v23, %v853_v8  ;;  %v868_v40 = vadd.f32 %v1378_v28, %v867_v13  ;;  %v835_v41 = vmul.f32 %v1380_v37, %v812_v26  ;;  %vm840_vm5 = vweird.f32 %v1380_v37 }
 0x341   : > { %v862_v51 = vsel %vm859_vm13, %v861_v38, %v857_v39  ;;  %vm841_vm7 = vmor %vm839_vm6, %vm840_vm5 }
 0x342   : > { %v872_v43 = vsel %vm871_vm15, %v1378_v28, %v868_v40  ;;  %v836_v44 = vsub.f32 1.0, %v835_v41  ;;  %v863_v45 = vmul.f32 %v1830_v58, %v862_v51 }
 0x343   : > { %v877_v46 = vsel %vm874_vm3, %v876_v42, %v872_v43 }
 0x344   : > { %v837_v48 = vmul.f32 %v1380_v37, %v836_v44  ;;  %1262 = vmatmul.msk.f32.vlgmr.msra.gmra.mxu2 %vm782_vm4, %v863_v45  ;;  %v878_v50 = vmul.f32 %v1834_v61, %v877_v46 }
 0x346   : > { %v838_v52 = vadd.f32 %v1380_v37, %v837_v48  ;;  %1263 = vmatmul.msk.f32.vlgmr.msra.gmra.mxu3 %vm782_vm4, %v878_v50 }
 0x348   : > { %v842_v54 = vsel %vm841_vm7, %v1380_v37, %v838_v52 }
 0x349   : > { %v847_v55 = vsel %vm844_vm8, %v846_v53, %v842_v54 }
 0x34a   : > { %v848_v58 = vmul.f32 %v1838_v0, %v847_v55 }
 0x34c   : > { %1261 = vmatmul.msk.f32.vlgmr.msra.gmra.mxu1 %vm782_vm4, %v848_v58  ;;  %vm1097_vm4 = vcmask 523264  }
 0x3b9   : > { %v899_v56 = vpop.f32.mrf.mxu0 }
 0x3ba   : > { %v973_v57 = vrot.slane %v899_v56, 4 }
 0x3c7   : > { %v945_v59 = vpop.f32.mrf.mxu2 }
 0x3c8   : > { %v971_v60 = vrot.slane %v945_v59, 4  ;;  %v974_v62 = vsel %vm307_vm1, %v945_v59, %v973_v57 }
 0x3c9   : > { %v982_v61 = vperm.slane %v974_v62, %v1709_v12  ;;  %v922_v63 = vpop.f32.mrf.mxu1  ;;  %v968_v1 = vpop.f32.mrf.mxu3  ;;  %v250_v62 = vld [vmem:[#allocation7 + $0x30] sm:$0xff] }
 0x3ca   : > { %v972_v2 = vsel %vm307_vm1, %v971_v60, %v899_v56  ;;  %v985_v3 = vrot.slane %v922_v63, 4  ;;  %v983_v5 = vrot.slane %v968_v1, 4  ;;  %v251_v60 = vld [vmem:[#allocation7 + $0x38] sm:$0xff] }
 0x3cb   : > { %v978_v6 = vperm.slane %v972_v2, %v1709_v12  ;;  %v1009_v11 = vrot.slane %v982_v61, 4  ;;  %1109 = vmatpush.msrb.mxu0 %v251_v60  ;;  %v245_v2 = vld [vmem:[#allocation7 + $0x8] sm:$0xff] }
 0x3cc   : > { %v984_v0 = vsel %vm307_vm1, %v983_v5, %v922_v63  ;;  %v986_v7 = vsel %vm307_vm1, %v968_v1, %v985_v3  ;;  %v247_v63 = vld [vmem:[#allocation7 + $0x18] sm:$0xff]  ;;  %v246_v1 = vld [vmem:[#allocation7 + $0x10] sm:$0xff]  ;;  %v244_v3 = vld [vmem:[#allocation7] sm:$0xff] }
 0x3cd   : > { %v997_v9 = vrot.slane %v978_v6, 4  ;;  %v990_v4 = vperm.slane %v984_v0, %v1709_v12  ;;  %v994_v15 = vperm.slane %v986_v7, %v1709_v12  ;;  %1110 = vmatpush.msrb.mxu0 %v250_v62 }
 0x3cf   : > { %v995_v16 = vrot.slane %v990_v4, 4  ;;  %v998_v17 = vsel %vm307_vm1, %v990_v4, %v997_v9  ;;  %v1007_v18 = vrot.slane %v994_v15, 4  ;;  %v1010_v19 = vsel %vm307_vm1, %v994_v15, %v1009_v11 }
 0x3d0   : > { %v1006_v20 = vperm.slane %v998_v17, %v1715_v21  ;;  %v1018_v22 = vperm.slane %v1010_v19, %v1715_v21 }
 0x3d1   : > { %v996_v23 = vsel %vm307_vm1, %v995_v16, %v978_v6  ;;  %v1008_v24 = vsel %vm307_vm1, %v1007_v18, %v982_v61  ;;  %v248_v61 = vld [vmem:[#allocation7 + $0x20] sm:$0xff] }
 0x3d2   : > { %v1002_v25 = vperm.slane %v996_v23, %v1715_v21  ;;  %v1014_v26 = vperm.slane %v1008_v24, %v1715_v21  ;;  %v1021_v27 = vrot.slane %v1006_v20, 4  ;;  %v1025_v28 = vrot.slane %v1018_v22, 4 }
 0x3d4   : > { %v1019_v29 = vrot.slane %v1002_v25, 4  ;;  %v1022_v30 = vsel %vm307_vm1, 0.0, %v1021_v27  ;;  %v1023_v31 = vrot.slane %v1014_v26, 4  ;;  %v1026_v32 = vsel %vm307_vm1, 0.0, %v1025_v28 }
 0x3d5   : > { %v1027_v33 = vsel %vm307_vm1, %v1021_v27, %v1002_v25  ;;  %v1032_v10 = vrot.slane %v1022_v30, 4  ;;  %v1038_v34 = vsel %vm307_vm1, %v1025_v28, %v1014_v26  ;;  %v1043_v35 = vrot.slane %v1026_v32, 4 }
 0x3d6   : > { %v1024_v14 = vsel %vm307_vm1, 0.0, %v1023_v31  ;;  %v1020_v8 = vsel %vm307_vm1, 0.0, %v1019_v29  ;;  %v1031_v13 = vperm.slane %v1027_v33, %v1709_v12  ;;  %v1042_v36 = vperm.slane %v1038_v34, %v1709_v12 }
 0x3d7   : > { %v1033_v37 = vsel %vm307_vm1, %v1032_v10, %v1020_v8  ;;  %v1044_v38 = vsel %vm307_vm1, %v1043_v35, %v1024_v14 }
 0x3d8   : > { %v1037_v39 = vperm.slane %v1033_v37, %v1709_v12  ;;  %v1048_v40 = vperm.slane %v1044_v38, %v1709_v12  ;;  %v1051_v41 = vrot.slane %v1031_v13, 4  ;;  %v1063_v51 = vrot.slane %v1042_v36, 4 }
 0x3da   : > { %v1052_v42 = vsel %vm307_vm1, %v1037_v39, %v1051_v41  ;;  %v1064_v43 = vsel %vm307_vm1, %v1048_v40, %v1063_v51  ;;  %v1049_v44 = vrot.slane %v1037_v39, 4  ;;  %v1061_v45 = vrot.slane %v1048_v40, 4 }
 0x3db   : > { %v1060_v46 = vperm.slane %v1052_v42, %v1715_v21  ;;  %v1072_v47 = vperm.slane %v1064_v43, %v1715_v21 }
 0x3dc   : > { %v1050_v48 = vsel %vm307_vm1, %v1049_v44, %v1031_v13  ;;  %v1062_v49 = vsel %vm307_vm1, %v1061_v45, %v1042_v36 }
 0x3dd   : > { %v1079_v50 = vrot.slane %v1060_v46, 4  ;;  %v1077_v52 = vrot.slane %v1072_v47, 4  ;;  %v1056_v12 = vperm.slane %v1050_v48, %v1715_v21  ;;  %v1068_v53 = vperm.slane %v1062_v49, %v1715_v21  ;;  %v249_v21 = vld [vmem:[#allocation7 + $0x28] sm:$0xff] }
 0x3de   : > { %1111 = vmatpush.msrb.mxu0 %v249_v21 }
 0x3df   : > { %v1080_v54 = vsel %vm307_vm1, %v1072_v47, %v1079_v50  ;;  %v1078_v55 = vsel %vm307_vm1, %v1077_v52, %v1060_v46  ;;  %v1073_v58 = vrot.slane %v1068_v53, 4  ;;  %v1075_v56 = vrot.slane %v1056_v12, 4 }
 0x3e0   : > { %1090 = vrot.lane.b32.xlu1 %v1080_v54, %s1571_s18  ;;  %1086 = vrot.lane.b32.xlu2 %v1078_v55, %s1572_s26 }
 0x3e1   : > { %v1076_v57 = vsel %vm307_vm1, %v1068_v53, %v1075_v56  ;;  %v1074_v59 = vsel %vm307_vm1, %v1073_v58, %v1056_v12  ;;  %1112 = vmatpush.msrb.mxu0 %v248_v61  ;;  %vm1095_vm1 = vcmask 392192  }
 0x3e2   : > { %1082 = vrot.lane.b32.xlu0 %v1076_v57, %s1573_s27 }
 0x3e3   : > { %1113 = vmatpush.msrb.mxu0 %v247_v63 }
 0x3e5   : > { %1114 = vmatpush.msrb.mxu0 %v246_v1 }
 0x3e7   : > { %1115 = vmatpush.msrb.mxu0 %v245_v2 }
 0x3e9   : > { %1116 = vmatpush.msrb.mxu0 %v244_v3 }
 0x43a   : > { %v1087_v6 = vpop.permute.xlu2 %1086 }
 0x452   : > { %v1091_v7 = vpop.permute.xlu1 %1090 }
 0x454   : > { %v1083_v5 = vpop.permute.xlu0 %1082 }
 0x455   : > { %v1093_v0 = vsel %vm659_vm2, %v1074_v59, %v1083_v5 }
 0x456   : > { %v1094_v9 = vsel %vm252_vm0, %v1093_v0, %v1087_v6 }
 0x457   : > { %v1096_v11 = vsel %vm1095_vm1, %v1094_v9, %v1091_v7 }
 0x458   : > { %1264 = vmatmul.msk.f32.vlgmr.msrb.gmra.mxu0 %vm1097_vm4, %v1096_v11 }
 0x4d5   : > { %v1118_v4 = vpop.f32.mrf.mxu0 }
 0x4d6   : > { %1121 = vst.msk [vmem:[%s234_s5] sm:$0xff] %vm1097_vm4, %v1118_v4 }
 0x4d7   : > { %1498 = shalt.err (!%p1495_p13)
}
 0x4d8   : > { %1279 = dma.vmem_to_hbm [thread:$0]  (%p1668_p0), %s1137_s6, 128, %s1139_s10, %s1123_s11  }
 0x4d9 PF: > { %s1150_s7 = sand.u32 1, %s1537_s12   ;;  %p1293_p2 = pnand %p1242_p6, %p1675_p5 }
 0x4da   : > { %s1151_s26 = scalar_lea.sflag [#allocation4], %s1150_s7 }
 0x4db   : > { %p1294_p4 = pneg %p1293_p2 }
 0x4dd   : > { %1532 = dma.done.wait (%p1294_p4), %s1151_s26, 128  }
 0x4de   : > { %1534 = vsyncadd (%p1294_p4), %s1151_s26, 4294967168  ;;  %s20_s17 = sadd.s32 1, %s1557_s17   ;;  %s1981_s12 = smov %s1541_s13 }
 0x4df   : > { %p17_p7 = scmp.ge.s32.totalorder %s20_s17, 4   ;;  %s1982_s13 = smov %s1545_s14 }
 0x4e0   : > { %s1983_s14 = smov %s1673_s22  ;;  %s1984_s15 = smov %s1553_s16 }
 0x4e1   : > { %s1985_s16 = smov %s1987_s8  ;;  %19 = sbr.rel (!%p17_p7) target bundleno = 7 (0x7), region = 85 }
 0x4e6   :  { %1157 = vsyncpa [#allocation3], 1 }
 0x4e7   :  { %1159 = vsyncpa [#allocation3 + $0x1], 1 }
 0x4e8   :  { %1160 = vsyncpa [#allocation6], 1 }
 0x4e9   :  { %1161 = vsyncpa [#allocation4], 1 }
 0x4ea   :  { %1163 = vsyncpa [#allocation4 + $0x1], 1 }

</bundles_post_ra>
